<compile_context>
chip_gen: v5e
topology: v5e:2x2
jax: 0.10.0
libtpu: 0.0.40
codegen_flags: <defaults>
</compile_context>

<pallas_src>
import functools

import jax
import jax.numpy as jnp
from jax.experimental import pallas as pl
from jax.experimental.pallas import tpu as pltpu


def _identity_block_kernel(z_ref, o_ref):
    # Elementwise pass-through of one VMEM-resident block.  A concrete
    # regularizer subclass would fuse its per-element math here.
    o_ref[...] = z_ref[...]


_LANE_CHOICES = (32768, 16384, 8192, 4096, 2048, 1024, 512, 256, 128)


def _factorize_lane_dense(total: int):
    """Return (lanes, pad) with lanes % 128 == 0 and (total + pad) % lanes == 0."""
    for lanes in _LANE_CHOICES:
        if total % lanes == 0:
            return lanes, 0
    lanes = 128
    return lanes, (-total) % lanes


def _sublane_unit(dtype) -> int:
    """Sublane granularity: 8 for 32-bit, 16 for bf16, 32 for int8/fp8."""
    itemsize = jnp.dtype(dtype).itemsize
    return max(8, 8 * (4 // max(itemsize, 1)))


def _choose_tile_rows(rows: int, lanes: int, itemsize: int, sub: int,
                      target_bytes: int) -> int:
    """Largest multiple-of-`sub` row count that (a) fits the ~4 MiB budget,
    (b) divides `rows` exactly when possible (no masked last block), and
    (c) leaves >= 2 grid steps when rows allow it (v7x has 2 TensorCores)."""
    if rows <= sub:
        return rows
    budget = max(sub, (target_bytes // (lanes * itemsize)) // sub * sub)
    upper = min(budget, rows)
    if rows >= 2 * sub:
        upper = min(upper, max(sub, (rows // 2) // sub * sub))
    t = (upper // sub) * sub
    while t >= sub:
        if rows % t == 0:
            return t
        t -= sub
    # No divisible tile found; masked last block is still correct.
    return min(upper, rows)


def abstract_regularizer_forward(z: jax.Array, *, launch_kernel: bool = False):
    """Pallas-backed forward: returns (z_out, log_dict).

    The abstract base class forward is a pure identity, so by default we do
    NOT launch a kernel (cheapest correct path on every TPU generation).
    `launch_kernel=True` exercises the Pallas pass-through pipeline that a
    concrete subclass would fuse real regularizer math into.
    """
    if not launch_kernel:
        return z, {}

    total = z.size
    lanes, pad = _factorize_lane_dense(total)
    itemsize = jnp.dtype(z.dtype).itemsize
    sub = _sublane_unit(z.dtype)

    flat = z.reshape(-1)
    if pad:
        flat = jnp.pad(flat, (0, pad))
    padded = total + pad
    rows = padded // lanes
    z2d = flat.reshape(rows, lanes)

    # ~4 MiB blocks: per-step pipeline overhead (~0.35 us) is ~4-5% of the DMA
    # time; double-buffered in + out = 16 MiB worst case, covered by the
    # explicit 32 MiB scoped-VMEM limit below (physical VMEM >= 64 MiB on
    # v5e/v6e/v7x).
    tile_r = _choose_tile_rows(rows, lanes, itemsize, sub, 4 << 20)
    grid = (pl.cdiv(rows, tile_r),)

    out2d = pl.pallas_call(
        _identity_block_kernel,
        out_shape=jax.ShapeDtypeStruct((rows, lanes), z.dtype),
        grid=grid,
        in_specs=[pl.BlockSpec((tile_r, lanes), lambda i: (i, 0))],
        out_specs=pl.BlockSpec((tile_r, lanes), lambda i: (i, 0)),
        # Pure identity: alias input->output.  This only removes HBM traffic
        # when the caller donates z (jax.jit(..., donate_argnums=0)); without
        # donation XLA inserts a defensive copy and aliasing is merely neutral.
        input_output_aliases={0: 0},
        compiler_params=pltpu.CompilerParams(
            dimension_semantics=("parallel",),
            vmem_limit_bytes=32 << 20,
        ),
    )(z2d)

    if pad:
        z_out = out2d.reshape(-1)[:total].reshape(z.shape)
    else:
        z_out = out2d.reshape(z.shape)
    log_dict = {}  # abstract base class logs nothing
    return z_out, log_dict


def get_trainable_parameters():
    # TODO(synk): abstract in the reference; the base class owns no parameters.
    return ()


if __name__ == "__main__":
    key = jax.random.PRNGKey(0)
    shape = (2, 4, 16, 16)
    z = jax.random.normal(key, shape, dtype=jnp.float32)
    # Deterministic reference copy (separate buffer) for post-donation compare.
    z_ref = jax.random.normal(key, shape, dtype=jnp.float32)

    # Default abstract-base path: no kernel launch, pure pass-through.
    z_sc, log_sc = abstract_regularizer_forward(z)
    assert z_sc is z and log_sc == {}

    # Kernel path: donate the input so input_output_aliases can truly reuse
    # the HBM buffer instead of inserting a defensive copy.
    fwd = jax.jit(
        functools.partial(abstract_regularizer_forward, launch_kernel=True),
        donate_argnums=0,
    )
    z_out, log = fwd(z)
    jax.block_until_ready(z_out)
    assert z_out.shape == shape and z_out.dtype == z_ref.dtype
    assert bool(jnp.allclose(z_out, z_ref))
    assert log == {}

    # Padded-fallback path (element count not a multiple of 128).
    w = jax.random.normal(jax.random.PRNGKey(0), (2, 3, 5, 7), dtype=jnp.float32)
    w_out, _ = jax.jit(functools.partial(abstract_regularizer_forward,
                                         launch_kernel=True))(w)
    jax.block_until_ready(w_out)
    assert w_out.shape == w.shape
    assert bool(jnp.allclose(w_out, w))

    print("KERNEL_OK")
</pallas_src>

<mosaic_0001>
module attributes {stable_mosaic.version = 11 : i64} {
  func.func @_identity_block_kernel(%arg0: i32, %arg1: memref<1x2048xf32, #tpu.memory_space<vmem>>, %arg2: memref<1x2048xf32, #tpu.memory_space<vmem>>) attributes {dimension_semantics = [#tpu.dimension_semantics<parallel>], iteration_bounds = array<i64: 1>, scalar_prefetch = 0 : i64, scratch_operands = 0 : i64, tpu.core_type = #tpu.core_type<tc>, window_params = [{transform_indices = @transform_0, window_bounds = array<i64: 1, 2048>}, {transform_indices = @transform_1, window_bounds = array<i64: 1, 2048>}]} {
    %c0 = arith.constant 0 : index
    %c0_0 = arith.constant 0 : index
    %0 = vector.load %arg1[%c0, %c0_0] : memref<1x2048xf32, #tpu.memory_space<vmem>>, vector<1x2048xf32>
    %c0_1 = arith.constant 0 : index
    %c0_2 = arith.constant 0 : index
    %1 = vector.load %arg2[%c0_1, %c0_2] : memref<1x2048xf32, #tpu.memory_space<vmem>>, vector<1x2048xf32>
    tpu.vector_store %arg2[%c0_1, %c0_2], %0 {strides = array<i32>} : memref<1x2048xf32, #tpu.memory_space<vmem>>, vector<1x2048xf32>,
    return
  }
  func.func @transform_0(%arg0: i32) -> (i32, i32) {
    %c0_i32 = arith.constant 0 : i32
    %c0_i32_0 = arith.constant 0 : i32
    return %arg0, %c0_i32 : i32, i32
  }
  func.func @transform_1(%arg0: i32) -> (i32, i32) {
    %c0_i32 = arith.constant 0 : i32
    %c0_i32_0 = arith.constant 0 : i32
    return %arg0, %c0_i32 : i32, i32
  }
}

</mosaic_0001>

<bundles_post_ra>
// kernel: abstract_regularizer_forward.1
= control target key start
LH: loop header
LB: loop body
LE: loop exit
PB: predicated region body
PF: predicated region fallthrough
CT: control target
= control target key end

     0   :  { %s38_s0 = inlined_call_operand.vmem [shape: f32[1,2048], index: 0, kind: input, shape index: {}, may-alias: {0,1}]   ;;  %s39_s1 = inlined_call_operand.vmem [shape: f32[1,2048], index: 1, kind: output, shape index: {}, may-alias: {0,1}]  }
   0x1   :  { %v8_v0 = vld [vmem:[%s38_s0] sm:$0xff]  ;;  %v9_v1 = vld [vmem:[%s38_s0 + $0x8] sm:$0xff] }
   0x2   :  { %10 = vst [vmem:[%s39_s1] sm:$0xff] %v8_v0 }
   0x3   :  { %11 = vst [vmem:[%s39_s1 + $0x8] sm:$0xff] %v9_v1 }

</bundles_post_ra>
